<compile_context>
chip_gen: v7x
topology: tpu7x:2x2x1
jax: 0.10.0
libtpu: 0.0.40
codegen_flags: <defaults>
</compile_context>

<pallas_src>
import jax
import jax.numpy as jnp
import numpy as np
from jax.experimental import pallas as pl
from jax.experimental.pallas import tpu as pltpu

BN_EPS = 1e-5
MATMUL_DTYPE = jnp.bfloat16   # MXU-native operand dtype; accumulation stays f32


def _swish(x):
    # x * sigmoid(x); sigmoid(x) = 0.5 * tanh(x/2) + 0.5 keeps the transcendental on the
    # EUP slot and avoids a VALU divide entirely.
    return x * (0.5 * jnp.tanh(0.5 * x) + 0.5)


def _build_col(col_ref, v, H2, W2, C):
    """im2col (3x3, pad=1) of one image into col_ref.

    col[y, x, t*C:(t+1)*C] == zero_padded(v)[y+dy-1, x+dx-1, :] with t = dy*3+dx.
    Only the 1-pixel border strips of each tap block are zeroed; the interior is written
    exactly once.  When C >= 128 every store here is a full-vreg (lane-dense) store."""
    for dy in range(3):
        for dx in range(3):
            t = dy * 3 + dx
            c0, c1 = t * C, (t + 1) * C
            y0, y1 = max(0, 1 - dy), min(H2, H2 + 1 - dy)
            x0, x1 = max(0, 1 - dx), min(W2, W2 + 1 - dx)
            if y0 > 0:
                col_ref[0:y0, :, c0:c1] = jnp.zeros((y0, W2, C), jnp.float32)
            if y1 < H2:
                col_ref[y1:H2, :, c0:c1] = jnp.zeros((H2 - y1, W2, C), jnp.float32)
            if x0 > 0:
                col_ref[y0:y1, 0:x0, c0:c1] = jnp.zeros((y1 - y0, x0, C), jnp.float32)
            if x1 < W2:
                col_ref[y0:y1, x1:W2, c0:c1] = jnp.zeros((y1 - y0, W2 - x1, C), jnp.float32)
            col_ref[y0:y1, x0:x1, c0:c1] = v[y0 + dy - 1:y1 + dy - 1,
                                             x0 + dx - 1:x1 + dx - 1, :]


def _conv3x3(col_ref, v, w_ref, H2, W2, C):
    # one MXU matmul per conv: (H2*W2, 9*C) x (9*C, Cout); bf16 operands, f32 accumulation
    _build_col(col_ref, v, H2, W2, C)
    lhs = col_ref[...].reshape(H2 * W2, 9 * C).astype(MATMUL_DTYPE)
    return jnp.dot(lhs, w_ref[...], preferred_element_type=jnp.float32)   # (H2*W2, Cout) f32


def _tile_stats(y):
    """Per-image BN partials: (mean_i, M2_i) — numerically robust to combine (no E[x^2])."""
    rt = y.shape[0]
    mean = jnp.sum(y, axis=0, keepdims=True) * (1.0 / rt)    # (1, Cout)
    d = y - mean
    m2 = jnp.sum(d * d, axis=0, keepdims=True)               # (1, Cout)
    return jnp.concatenate([mean, m2], axis=0)               # (2, Cout)


def _bn_affine(stats, gamma, beta, r_img):
    """Combine per-image (mean, M2) into batch stats; fold BN into y*a + c (tiny XLA op)."""
    mean_i = stats[:, 0, :]                                  # (N, Cout)
    m2_i = stats[:, 1, :]                                    # (N, Cout)
    n = stats.shape[0]
    mean = jnp.mean(mean_i, axis=0)                          # (Cout,)
    m2 = jnp.sum(m2_i, axis=0) + r_img * jnp.sum((mean_i - mean) ** 2, axis=0)
    var = m2 / (n * r_img)                                   # biased, like PyTorch training BN
    a = gamma * jax.lax.rsqrt(var + BN_EPS)
    c = beta - mean * a
    return a.reshape(1, -1), c.reshape(1, -1)


# ----------------------------- kernel factories --------------------------------------------

def _make_pool_conv1_kernel(H2, W2, Cin):
    def kernel(xs_ref, w1_ref, y_ref, st_ref, col_ref):
        xw = xs_ref[0]                                        # (H2*W2, 4*Cin), space-to-depth
        # 2x2 max pool = 3 lane-contiguous maximums (no in-kernel relayout of the input)
        p01 = jnp.maximum(xw[:, 0:Cin], xw[:, Cin:2 * Cin])
        p23 = jnp.maximum(xw[:, 2 * Cin:3 * Cin], xw[:, 3 * Cin:4 * Cin])
        pooled = jnp.maximum(p01, p23).reshape(H2, W2, Cin)
        y = _conv3x3(col_ref, pooled, w1_ref, H2, W2, Cin)    # (H2*W2, Cout) f32
        y_ref[0] = y
        st_ref[0] = _tile_stats(y)
    return kernel


def _make_bn1_temb_conv2_kernel(H2, W2, Cout):
    def kernel(y1_ref, a1_ref, c1_ref, t_ref, wt_ref, bt_ref, w2_ref,
               y2_ref, st_ref, col_ref):
        # BN1 (folded scale/shift) + Swish
        h = _swish(y1_ref[0] * a1_ref[...] + c1_ref[...])     # (H2*W2, Cout) f32
        # time embedding: Linear -> Swish, broadcast over spatial (f32, it is tiny)
        te = _swish(jnp.dot(t_ref[0], wt_ref[...],
                            preferred_element_type=jnp.float32) + bt_ref[...])   # (1, Cout)
        h = (h + te).reshape(H2, W2, Cout)
        y = _conv3x3(col_ref, h, w2_ref, H2, W2, Cout)        # (H2*W2, Cout) f32
        y2_ref[0] = y
        st_ref[0] = _tile_stats(y)
    return kernel


def _make_bn2_kernel(H2, W2, Cout, fold_w):
    def kernel(y2_ref, a2_ref, c2_ref, o_ref):
        h = _swish(y2_ref[0] * a2_ref[...] + c2_ref[...])
        if fold_w:
            o_ref[0] = h.reshape(H2, W2 * Cout)               # lane-densify when Cout < 128
        else:
            o_ref[0] = h                                      # already lane-dense (Cout >= 128)
    return kernel


# ----------------------------- wrapper ------------------------------------------------------

def _vmem_limit(per_step_bytes):
    try:
        cap = int(pltpu.get_tpu_info().vmem_capacity_bytes)
    except Exception:
        cap = 64 << 20        # v7x physical VMEM; conservative default
    return int(min(max(2 * per_step_bytes, 16 << 20), cap - (8 << 20)))


def down_forward(x_nchw, t_emb, params):
    N, Cin, H, W = x_nchw.shape
    assert H % 2 == 0 and W % 2 == 0
    H2, W2 = H // 2, W // 2
    R_img = H2 * W2
    Cout = params["w1"].shape[0]
    Ct = t_emb.shape[1]
    f32 = jnp.float32

    # layout glue (wrapper): NCHW -> space-to-depth slab so pooling is lane-contiguous
    xs = (x_nchw.astype(f32)
          .reshape(N, Cin, H2, 2, W2, 2)
          .transpose(0, 2, 4, 3, 5, 1)                         # (N, H2, W2, 2, 2, Cin)
          .reshape(N, R_img, 4 * Cin))

    # conv weights as im2col matrices (9*C, Cout), bf16 for the MXU; k ordered (tap, channel)
    w1 = params["w1"].transpose(2, 3, 1, 0).reshape(9 * Cin, Cout).astype(MATMUL_DTYPE)
    w2 = params["w2"].transpose(2, 3, 1, 0).reshape(9 * Cout, Cout).astype(MATMUL_DTYPE)
    wt = params["wt"].T.astype(f32)                            # (Ct, Cout) — tiny, keep f32
    bt = params["bt"].reshape(1, Cout).astype(f32)
    g1, b1 = params["g1"].astype(f32), params["b1"].astype(f32)
    g2, b2 = params["g2"].astype(f32), params["b2"].astype(f32)
    t3 = t_emb.astype(f32).reshape(N, 1, Ct)

    par = ("parallel",)

    # ---- pass 1 (grid over N, parallel): pool + conv1, per-image BN1 partial stats ----
    est1 = 4 * (2 * R_img * 4 * Cin + 2 * R_img * Cout + R_img * 9 * Cin) + 2 * w1.size
    y1, st1 = pl.pallas_call(
        _make_pool_conv1_kernel(H2, W2, Cin),
        grid=(N,),
        in_specs=[
            pl.BlockSpec((1, R_img, 4 * Cin), lambda n: (n, 0, 0)),
            pl.BlockSpec((9 * Cin, Cout), lambda n: (0, 0)),
        ],
        out_specs=(
            pl.BlockSpec((1, R_img, Cout), lambda n: (n, 0, 0)),
            pl.BlockSpec((1, 2, Cout), lambda n: (n, 0, 0)),
        ),
        out_shape=(
            jax.ShapeDtypeStruct((N, R_img, Cout), f32),
            jax.ShapeDtypeStruct((N, 2, Cout), f32),
        ),
        scratch_shapes=[pltpu.VMEM((H2, W2, 9 * Cin), f32)],
        compiler_params=pltpu.CompilerParams(
            dimension_semantics=par, vmem_limit_bytes=_vmem_limit(est1)),
    )(xs, w1)

    # tiny O(Cout) finalize of BN1 batch statistics (plain XLA)
    a1, c1 = _bn_affine(st1, g1, b1, R_img)

    # ---- pass 2 (grid over N, parallel): BN1+swish + time-emb + conv2, BN2 partials ----
    est2 = (4 * (4 * R_img * Cout + R_img * 9 * Cout)
            + 2 * w2.size + 4 * (wt.size + bt.size + 2 * Cout))
    y2, st2 = pl.pallas_call(
        _make_bn1_temb_conv2_kernel(H2, W2, Cout),
        grid=(N,),
        in_specs=[
            pl.BlockSpec((1, R_img, Cout), lambda n: (n, 0, 0)),
            pl.BlockSpec((1, Cout), lambda n: (0, 0)),
            pl.BlockSpec((1, Cout), lambda n: (0, 0)),
            pl.BlockSpec((1, 1, Ct), lambda n: (n, 0, 0)),
            pl.BlockSpec((Ct, Cout), lambda n: (0, 0)),
            pl.BlockSpec((1, Cout), lambda n: (0, 0)),
            pl.BlockSpec((9 * Cout, Cout), lambda n: (0, 0)),
        ],
        out_specs=(
            pl.BlockSpec((1, R_img, Cout), lambda n: (n, 0, 0)),
            pl.BlockSpec((1, 2, Cout), lambda n: (n, 0, 0)),
        ),
        out_shape=(
            jax.ShapeDtypeStruct((N, R_img, Cout), f32),
            jax.ShapeDtypeStruct((N, 2, Cout), f32),
        ),
        scratch_shapes=[pltpu.VMEM((H2, W2, 9 * Cout), f32)],
        compiler_params=pltpu.CompilerParams(
            dimension_semantics=par, vmem_limit_bytes=_vmem_limit(est2)),
    )(y1, a1, c1, t3, wt, bt, w2)

    a2, c2 = _bn_affine(st2, g2, b2, R_img)

    # ---- pass 3 (grid over N, parallel): BN2 + swish (elementwise) ----
    fold_w = Cout < 128
    o_shape = (N, H2, W2 * Cout) if fold_w else (N, R_img, Cout)
    o_block = (1, H2, W2 * Cout) if fold_w else (1, R_img, Cout)
    est3 = 4 * (4 * R_img * Cout + 4 * Cout)
    o = pl.pallas_call(
        _make_bn2_kernel(H2, W2, Cout, fold_w),
        grid=(N,),
        in_specs=[
            pl.BlockSpec((1, R_img, Cout), lambda n: (n, 0, 0)),
            pl.BlockSpec((1, Cout), lambda n: (0, 0)),
            pl.BlockSpec((1, Cout), lambda n: (0, 0)),
        ],
        out_specs=pl.BlockSpec(o_block, lambda n: (n, 0, 0)),
        out_shape=jax.ShapeDtypeStruct(o_shape, f32),
        compiler_params=pltpu.CompilerParams(
            dimension_semantics=par, vmem_limit_bytes=_vmem_limit(est3)),
    )(y2, a2, c2)

    # back to the module's NCHW contract (layout glue only)
    return o.reshape(N, H2, W2, Cout).transpose(0, 3, 1, 2)


# ----------------------------- pure-JAX reference -------------------------------------------

def down_reference(x, t_emb, p):
    """Pure-JAX f32 reference mirroring the PyTorch forward (training-mode BN)."""
    N, Cin, H, W = x.shape
    H2, W2 = H // 2, W // 2
    xp = x.reshape(N, Cin, H2, 2, W2, 2).max(axis=(3, 5))

    def conv(h, w):
        return jax.lax.conv_general_dilated(
            h, w, window_strides=(1, 1), padding=((1, 1), (1, 1)),
            dimension_numbers=("NCHW", "OIHW", "NCHW"))

    def sigmoid(z):
        return 1.0 / (1.0 + jnp.exp(-z))

    def bn_swish(h, g, b):
        mean = h.mean(axis=(0, 2, 3), keepdims=True)
        var = ((h - mean) ** 2).mean(axis=(0, 2, 3), keepdims=True)
        y = (h - mean) * jax.lax.rsqrt(var + BN_EPS)
        y = y * g[None, :, None, None] + b[None, :, None, None]
        return y * sigmoid(y)

    h = bn_swish(conv(xp, p["w1"]), p["g1"], p["b1"])
    te = t_emb @ p["wt"].T + p["bt"]
    te = te * sigmoid(te)
    h = h + te[:, :, None, None]
    h = bn_swish(conv(h, p["w2"]), p["g2"], p["b2"])
    return h


if __name__ == "__main__":
    N, Cin, Cout, Ct, H, W = 2, 4, 8, 16, 16, 16
    key = jax.random.PRNGKey(0)
    ks = jax.random.split(key, 10)

    x = jax.random.normal(ks[0], (N, Cin, H, W), jnp.float32)
    t_emb = jax.random.normal(ks[1], (N, Ct), jnp.float32)

    params = {
        "w1": 0.2 * jax.random.normal(ks[2], (Cout, Cin, 3, 3), jnp.float32),   # conv1
        "g1": 1.0 + 0.1 * jax.random.normal(ks[3], (Cout,), jnp.float32),       # bn1 gamma
        "b1": 0.1 * jax.random.normal(ks[4], (Cout,), jnp.float32),             # bn1 beta
        "wt": 0.2 * jax.random.normal(ks[5], (Cout, Ct), jnp.float32),          # time linear W
        "bt": 0.1 * jax.random.normal(ks[6], (Cout,), jnp.float32),             # time linear b
        "w2": 0.2 * jax.random.normal(ks[7], (Cout, Cout, 3, 3), jnp.float32),  # conv2
        "g2": 1.0 + 0.1 * jax.random.normal(ks[8], (Cout,), jnp.float32),       # bn2 gamma
        "b2": 0.1 * jax.random.normal(ks[9], (Cout,), jnp.float32),             # bn2 beta
    }

    out = jax.block_until_ready(down_forward(x, t_emb, params))
    ref = jax.block_until_ready(down_reference(x, t_emb, params))

    assert out.shape == (N, Cout, H // 2, W // 2)
    # Tolerance sized for bf16 MXU operands (conv im2col LHS + weights); accumulation,
    # BatchNorm statistics and all elementwise math stay f32.
    np.testing.assert_allclose(np.asarray(out), np.asarray(ref), rtol=4e-2, atol=4e-2)
    print("KERNEL_OK")
</pallas_src>

<mosaic_0001>
module attributes {stable_mosaic.version = 11 : i64} {
  func.func @kernel(%arg0: i32, %arg1: memref<1x64x16xf32, #tpu.memory_space<vmem>>, %arg2: memref<36x8xbf16, #tpu.memory_space<vmem>>, %arg3: memref<1x64x8xf32, #tpu.memory_space<vmem>>, %arg4: memref<1x2x8xf32, #tpu.memory_space<vmem>>, %arg5: memref<8x8x36xf32, #tpu.memory_space<vmem>>) attributes {dimension_semantics = [#tpu.dimension_semantics<parallel>], iteration_bounds = array<i64: 2>, scalar_prefetch = 0 : i64, scratch_operands = 1 : i64, tpu.core_type = #tpu.core_type<tc>, window_params = [{transform_indices = @transform_0, window_bounds = array<i64: 1, 64, 16>}, {pipeline_mode = #tpu.pipeline_mode<synchronous>, transform_indices = @transform_1, window_bounds = array<i64: 36, 8>}, {transform_indices = @transform_2, window_bounds = array<i64: 1, 64, 8>}, {transform_indices = @transform_3, window_bounds = array<i64: 1, 2, 8>}]} {
    %c0 = arith.constant 0 : index
    %c0_0 = arith.constant 0 : index
    %c0_1 = arith.constant 0 : index
    %0 = vector.load %arg1[%c0, %c0_0, %c0_1] : memref<1x64x16xf32, #tpu.memory_space<vmem>>, vector<1x64x16xf32>
    %1 = vector.shape_cast %0 : vector<1x64x16xf32> to vector<64x16xf32>
    %2 = vector.extract_strided_slice %1 {offsets = [0, 0], sizes = [64, 4], strides = [1, 1]} : vector<64x16xf32> to vector<64x4xf32>
    %3 = vector.extract_strided_slice %1 {offsets = [0, 4], sizes = [64, 4], strides = [1, 1]} : vector<64x16xf32> to vector<64x4xf32>
    %4 = arith.maximumf %2, %3 : vector<64x4xf32>
    %5 = vector.extract_strided_slice %1 {offsets = [0, 8], sizes = [64, 4], strides = [1, 1]} : vector<64x16xf32> to vector<64x4xf32>
    %6 = vector.extract_strided_slice %1 {offsets = [0, 12], sizes = [64, 4], strides = [1, 1]} : vector<64x16xf32> to vector<64x4xf32>
    %7 = arith.maximumf %5, %6 : vector<64x4xf32>
    %8 = arith.maximumf %4, %7 : vector<64x4xf32>
    %9 = vector.shape_cast %8 : vector<64x4xf32> to vector<8x8x4xf32>
    %cst = arith.constant 0.000000e+00 : f32
    %10 = vector.broadcast %cst : f32 to vector<1x8x4xf32>
    %c0_2 = arith.constant 0 : index
    %c0_3 = arith.constant 0 : index
    %c0_4 = arith.constant 0 : index
    %11 = vector.load %arg5[%c0_2, %c0_3, %c0_4] : memref<8x8x36xf32, #tpu.memory_space<vmem>>, vector<1x8x4xf32>
    tpu.vector_store %arg5[%c0_2, %c0_3, %c0_4], %10 {strides = array<i32>} : memref<8x8x36xf32, #tpu.memory_space<vmem>>, vector<1x8x4xf32>,
    %cst_5 = arith.constant 0.000000e+00 : f32
    %12 = vector.broadcast %cst_5 : f32 to vector<7x1x4xf32>
    %c1 = arith.constant 1 : index
    %c0_6 = arith.constant 0 : index
    %c0_7 = arith.constant 0 : index
    %13 = vector.load %arg5[%c1, %c0_6, %c0_7] : memref<8x8x36xf32, #tpu.memory_space<vmem>>, vector<7x1x4xf32>
    tpu.vector_store %arg5[%c1, %c0_6, %c0_7], %12 {strides = array<i32>} : memref<8x8x36xf32, #tpu.memory_space<vmem>>, vector<7x1x4xf32>,
    %14 = vector.extract_strided_slice %9 {offsets = [0, 0, 0], sizes = [7, 7, 4], strides = [1, 1, 1]} : vector<8x8x4xf32> to vector<7x7x4xf32>
    %c1_8 = arith.constant 1 : index
    %c1_9 = arith.constant 1 : index
    %c0_10 = arith.constant 0 : index
    %15 = vector.load %arg5[%c1_8, %c1_9, %c0_10] : memref<8x8x36xf32, #tpu.memory_space<vmem>>, vector<7x7x4xf32>
    tpu.vector_store %arg5[%c1_8, %c1_9, %c0_10], %14 {strides = array<i32>} : memref<8x8x36xf32, #tpu.memory_space<vmem>>, vector<7x7x4xf32>,
    %cst_11 = arith.constant 0.000000e+00 : f32
    %16 = vector.broadcast %cst_11 : f32 to vector<1x8x4xf32>
    %c0_12 = arith.constant 0 : index
    %c0_13 = arith.constant 0 : index
    %c4 = arith.constant 4 : index
    %17 = vector.load %arg5[%c0_12, %c0_13, %c4] : memref<8x8x36xf32, #tpu.memory_space<vmem>>, vector<1x8x4xf32>
    tpu.vector_store %arg5[%c0_12, %c0_13, %c4], %16 {strides = array<i32>} : memref<8x8x36xf32, #tpu.memory_space<vmem>>, vector<1x8x4xf32>,
    %18 = vector.extract_strided_slice %9 {offsets = [0, 0, 0], sizes = [7, 8, 4], strides = [1, 1, 1]} : vector<8x8x4xf32> to vector<7x8x4xf32>
    %c1_14 = arith.constant 1 : index
    %c0_15 = arith.constant 0 : index
    %c4_16 = arith.constant 4 : index
    %19 = vector.load %arg5[%c1_14, %c0_15, %c4_16] : memref<8x8x36xf32, #tpu.memory_space<vmem>>, vector<7x8x4xf32>
    tpu.vector_store %arg5[%c1_14, %c0_15, %c4_16], %18 {strides = array<i32>} : memref<8x8x36xf32, #tpu.memory_space<vmem>>, vector<7x8x4xf32>,
    %cst_17 = arith.constant 0.000000e+00 : f32
    %20 = vector.broadcast %cst_17 : f32 to vector<1x8x4xf32>
    %c0_18 = arith.constant 0 : index
    %c0_19 = arith.constant 0 : index
    %c8 = arith.constant 8 : index
    %21 = vector.load %arg5[%c0_18, %c0_19, %c8] : memref<8x8x36xf32, #tpu.memory_space<vmem>>, vector<1x8x4xf32>
    tpu.vector_store %arg5[%c0_18, %c0_19, %c8], %20 {strides = array<i32>} : memref<8x8x36xf32, #tpu.memory_space<vmem>>, vector<1x8x4xf32>,
    %cst_20 = arith.constant 0.000000e+00 : f32
    %22 = vector.broadcast %cst_20 : f32 to vector<7x1x4xf32>
    %c1_21 = arith.constant 1 : index
    %c7 = arith.constant 7 : index
    %c8_22 = arith.constant 8 : index
    %23 = vector.load %arg5[%c1_21, %c7, %c8_22] : memref<8x8x36xf32, #tpu.memory_space<vmem>>, vector<7x1x4xf32>
    tpu.vector_store %arg5[%c1_21, %c7, %c8_22], %22 {strides = array<i32>} : memref<8x8x36xf32, #tpu.memory_space<vmem>>, vector<7x1x4xf32>,
    %24 = vector.extract_strided_slice %9 {offsets = [0, 1, 0], sizes = [7, 7, 4], strides = [1, 1, 1]} : vector<8x8x4xf32> to vector<7x7x4xf32>
    %c1_23 = arith.constant 1 : index
    %c0_24 = arith.constant 0 : index
    %c8_25 = arith.constant 8 : index
    %25 = vector.load %arg5[%c1_23, %c0_24, %c8_25] : memref<8x8x36xf32, #tpu.memory_space<vmem>>, vector<7x7x4xf32>
    tpu.vector_store %arg5[%c1_23, %c0_24, %c8_25], %24 {strides = array<i32>} : memref<8x8x36xf32, #tpu.memory_space<vmem>>, vector<7x7x4xf32>,
    %cst_26 = arith.constant 0.000000e+00 : f32
    %26 = vector.broadcast %cst_26 : f32 to vector<8x1x4xf32>
    %c0_27 = arith.constant 0 : index
    %c0_28 = arith.constant 0 : index
    %c12 = arith.constant 12 : index
    %27 = vector.load %arg5[%c0_27, %c0_28, %c12] : memref<8x8x36xf32, #tpu.memory_space<vmem>>, vector<8x1x4xf32>
    tpu.vector_store %arg5[%c0_27, %c0_28, %c12], %26 {strides = array<i32>} : memref<8x8x36xf32, #tpu.memory_space<vmem>>, vector<8x1x4xf32>,
    %28 = vector.extract_strided_slice %9 {offsets = [0, 0, 0], sizes = [8, 7, 4], strides = [1, 1, 1]} : vector<8x8x4xf32> to vector<8x7x4xf32>
    %c0_29 = arith.constant 0 : index
    %c1_30 = arith.constant 1 : index
    %c12_31 = arith.constant 12 : index
    %29 = vector.load %arg5[%c0_29, %c1_30, %c12_31] : memref<8x8x36xf32, #tpu.memory_space<vmem>>, vector<8x7x4xf32>
    tpu.vector_store %arg5[%c0_29, %c1_30, %c12_31], %28 {strides = array<i32>} : memref<8x8x36xf32, #tpu.memory_space<vmem>>, vector<8x7x4xf32>,
    %c0_32 = arith.constant 0 : index
    %c0_33 = arith.constant 0 : index
    %c16 = arith.constant 16 : index
    %30 = vector.load %arg5[%c0_32, %c0_33, %c16] : memref<8x8x36xf32, #tpu.memory_space<vmem>>, vector<8x8x4xf32>
    tpu.vector_store %arg5[%c0_32, %c0_33, %c16], %9 {strides = array<i32>} : memref<8x8x36xf32, #tpu.memory_space<vmem>>, vector<8x8x4xf32>,
    %cst_34 = arith.constant 0.000000e+00 : f32
    %31 = vector.broadcast %cst_34 : f32 to vector<8x1x4xf32>
    %c0_35 = arith.constant 0 : index
    %c7_36 = arith.constant 7 : index
    %c20 = arith.constant 20 : index
    %32 = vector.load %arg5[%c0_35, %c7_36, %c20] : memref<8x8x36xf32, #tpu.memory_space<vmem>>, vector<8x1x4xf32>
    tpu.vector_store %arg5[%c0_35, %c7_36, %c20], %31 {strides = array<i32>} : memref<8x8x36xf32, #tpu.memory_space<vmem>>, vector<8x1x4xf32>,
    %33 = vector.extract_strided_slice %9 {offsets = [0, 1, 0], sizes = [8, 7, 4], strides = [1, 1, 1]} : vector<8x8x4xf32> to vector<8x7x4xf32>
    %c0_37 = arith.constant 0 : index
    %c0_38 = arith.constant 0 : index
    %c20_39 = arith.constant 20 : index
    %34 = vector.load %arg5[%c0_37, %c0_38, %c20_39] : memref<8x8x36xf32, #tpu.memory_space<vmem>>, vector<8x7x4xf32>
    tpu.vector_store %arg5[%c0_37, %c0_38, %c20_39], %33 {strides = array<i32>} : memref<8x8x36xf32, #tpu.memory_space<vmem>>, vector<8x7x4xf32>,
    %cst_40 = arith.constant 0.000000e+00 : f32
    %35 = vector.broadcast %cst_40 : f32 to vector<1x8x4xf32>
    %c7_41 = arith.constant 7 : index
    %c0_42 = arith.constant 0 : index
    %c24 = arith.constant 24 : index
    %36 = vector.load %arg5[%c7_41, %c0_42, %c24] : memref<8x8x36xf32, #tpu.memory_space<vmem>>, vector<1x8x4xf32>
    tpu.vector_store %arg5[%c7_41, %c0_42, %c24], %35 {strides = array<i32>} : memref<8x8x36xf32, #tpu.memory_space<vmem>>, vector<1x8x4xf32>,
    %cst_43 = arith.constant 0.000000e+00 : f32
    %37 = vector.broadcast %cst_43 : f32 to vector<7x1x4xf32>
    %c0_44 = arith.constant 0 : index
    %c0_45 = arith.constant 0 : index
    %c24_46 = arith.constant 24 : index
    %38 = vector.load %arg5[%c0_44, %c0_45, %c24_46] : memref<8x8x36xf32, #tpu.memory_space<vmem>>, vector<7x1x4xf32>
    tpu.vector_store %arg5[%c0_44, %c0_45, %c24_46], %37 {strides = array<i32>} : memref<8x8x36xf32, #tpu.memory_space<vmem>>, vector<7x1x4xf32>,
    %39 = vector.extract_strided_slice %9 {offsets = [1, 0, 0], sizes = [7, 7, 4], strides = [1, 1, 1]} : vector<8x8x4xf32> to vector<7x7x4xf32>
    %c0_47 = arith.constant 0 : index
    %c1_48 = arith.constant 1 : index
    %c24_49 = arith.constant 24 : index
    %40 = vector.load %arg5[%c0_47, %c1_48, %c24_49] : memref<8x8x36xf32, #tpu.memory_space<vmem>>, vector<7x7x4xf32>
    tpu.vector_store %arg5[%c0_47, %c1_48, %c24_49], %39 {strides = array<i32>} : memref<8x8x36xf32, #tpu.memory_space<vmem>>, vector<7x7x4xf32>,
    %cst_50 = arith.constant 0.000000e+00 : f32
    %41 = vector.broadcast %cst_50 : f32 to vector<1x8x4xf32>
    %c7_51 = arith.constant 7 : index
    %c0_52 = arith.constant 0 : index
    %c28 = arith.constant 28 : index
    %42 = vector.load %arg5[%c7_51, %c0_52, %c28] : memref<8x8x36xf32, #tpu.memory_space<vmem>>, vector<1x8x4xf32>
    tpu.vector_store %arg5[%c7_51, %c0_52, %c28], %41 {strides = array<i32>} : memref<8x8x36xf32, #tpu.memory_space<vmem>>, vector<1x8x4xf32>,
    %43 = vector.extract_strided_slice %9 {offsets = [1, 0, 0], sizes = [7, 8, 4], strides = [1, 1, 1]} : vector<8x8x4xf32> to vector<7x8x4xf32>
    %c0_53 = arith.constant 0 : index
    %c0_54 = arith.constant 0 : index
    %c28_55 = arith.constant 28 : index
    %44 = vector.load %arg5[%c0_53, %c0_54, %c28_55] : memref<8x8x36xf32, #tpu.memory_space<vmem>>, vector<7x8x4xf32>
    tpu.vector_store %arg5[%c0_53, %c0_54, %c28_55], %43 {strides = array<i32>} : memref<8x8x36xf32, #tpu.memory_space<vmem>>, vector<7x8x4xf32>,
    %cst_56 = arith.constant 0.000000e+00 : f32
    %45 = vector.broadcast %cst_56 : f32 to vector<1x8x4xf32>
    %c7_57 = arith.constant 7 : index
    %c0_58 = arith.constant 0 : index
    %c32 = arith.constant 32 : index
    %46 = vector.load %arg5[%c7_57, %c0_58, %c32] : memref<8x8x36xf32, #tpu.memory_space<vmem>>, vector<1x8x4xf32>
    tpu.vector_store %arg5[%c7_57, %c0_58, %c32], %45 {strides = array<i32>} : memref<8x8x36xf32, #tpu.memory_space<vmem>>, vector<1x8x4xf32>,
    %cst_59 = arith.constant 0.000000e+00 : f32
    %47 = vector.broadcast %cst_59 : f32 to vector<7x1x4xf32>
    %c0_60 = arith.constant 0 : index
    %c7_61 = arith.constant 7 : index
    %c32_62 = arith.constant 32 : index
    %48 = vector.load %arg5[%c0_60, %c7_61, %c32_62] : memref<8x8x36xf32, #tpu.memory_space<vmem>>, vector<7x1x4xf32>
    tpu.vector_store %arg5[%c0_60, %c7_61, %c32_62], %47 {strides = array<i32>} : memref<8x8x36xf32, #tpu.memory_space<vmem>>, vector<7x1x4xf32>,
    %49 = vector.extract_strided_slice %9 {offsets = [1, 1, 0], sizes = [7, 7, 4], strides = [1, 1, 1]} : vector<8x8x4xf32> to vector<7x7x4xf32>
    %c0_63 = arith.constant 0 : index
    %c0_64 = arith.constant 0 : index
    %c32_65 = arith.constant 32 : index
    %50 = vector.load %arg5[%c0_63, %c0_64, %c32_65] : memref<8x8x36xf32, #tpu.memory_space<vmem>>, vector<7x7x4xf32>
    tpu.vector_store %arg5[%c0_63, %c0_64, %c32_65], %49 {strides = array<i32>} : memref<8x8x36xf32, #tpu.memory_space<vmem>>, vector<7x7x4xf32>,
    %c0_66 = arith.constant 0 : index
    %c0_67 = arith.constant 0 : index
    %c0_68 = arith.constant 0 : index
    %51 = vector.load %arg5[%c0_66, %c0_67, %c0_68] : memref<8x8x36xf32, #tpu.memory_space<vmem>>, vector<8x8x36xf32>
    %52 = vector.shape_cast %51 : vector<8x8x36xf32> to vector<64x36xf32>
    %53 = arith.truncf %52 : vector<64x36xf32> to vector<64x36xbf16>
    %c0_69 = arith.constant 0 : index
    %c0_70 = arith.constant 0 : index
    %54 = vector.load %arg2[%c0_69, %c0_70] : memref<36x8xbf16, #tpu.memory_space<vmem>>, vector<36x8xbf16>
    %cst_71 = arith.constant dense<0.000000e+00> : vector<64x8xf32>
    %55 = tpu.matmul %53, %54, %cst_71 {dimension_numbers = #tpu.dot_dimension_numbers<[1], [0], [0], [1], [0, 0, 1, 1], [], []>} : vector<64x36xbf16>, vector<36x8xbf16>, vector<64x8xf32> -> vector<64x8xf32>
    %c0_72 = arith.constant 0 : index
    %c0_73 = arith.constant 0 : index
    %c0_74 = arith.constant 0 : index
    %56 = vector.load %arg3[%c0_72, %c0_73, %c0_74] : memref<1x64x8xf32, #tpu.memory_space<vmem>>, vector<1x64x8xf32>
    %57 = vector.shape_cast %56 : vector<1x64x8xf32> to vector<64x8xf32>
    %58 = vector.shape_cast %55 : vector<64x8xf32> to vector<1x64x8xf32>
    tpu.vector_store %arg3[%c0_72, %c0_73, %c0_74], %58 {strides = array<i32>} : memref<1x64x8xf32, #tpu.memory_space<vmem>>, vector<1x64x8xf32>,
    %cst_75 = arith.constant dense<0.000000e+00> : vector<8xf32>
    %59 = vector.multi_reduction <add>, %55, %cst_75 [0] : vector<64x8xf32> to vector<8xf32>
    %60 = vector.shape_cast %59 : vector<8xf32> to vector<1x8xf32>
    %cst_76 = arith.constant 1.562500e-02 : f32
    %61 = vector.broadcast %cst_76 : f32 to vector<1x8xf32>
    %62 = arith.mulf %60, %61 : vector<1x8xf32>
    %63 = vector.broadcast %62 : vector<1x8xf32> to vector<64x8xf32>
    %64 = arith.subf %55, %63 : vector<64x8xf32>
    %65 = arith.mulf %64, %64 : vector<64x8xf32>
    %cst_77 = arith.constant dense<0.000000e+00> : vector<8xf32>
    %66 = vector.multi_reduction <add>, %65, %cst_77 [0] : vector<64x8xf32> to vector<8xf32>
    %67 = vector.shape_cast %66 : vector<8xf32> to vector<1x8xf32>
    %68 = tpu.concatenate %62, %67 in 0 : vector<1x8xf32>, vector<1x8xf32> -> vector<2x8xf32>
    %c0_78 = arith.constant 0 : index
    %c0_79 = arith.constant 0 : index
    %c0_80 = arith.constant 0 : index
    %69 = vector.load %arg4[%c0_78, %c0_79, %c0_80] : memref<1x2x8xf32, #tpu.memory_space<vmem>>, vector<1x2x8xf32>
    %70 = vector.shape_cast %69 : vector<1x2x8xf32> to vector<2x8xf32>
    %71 = vector.shape_cast %68 : vector<2x8xf32> to vector<1x2x8xf32>
    tpu.vector_store %arg4[%c0_78, %c0_79, %c0_80], %71 {strides = array<i32>} : memref<1x2x8xf32, #tpu.memory_space<vmem>>, vector<1x2x8xf32>,
    return
  }
  func.func @transform_0(%arg0: i32) -> (i32, i32, i32) {
    %c0_i32 = arith.constant 0 : i32
    %c0_i32_0 = arith.constant 0 : i32
    %c0_i32_1 = arith.constant 0 : i32
    return %arg0, %c0_i32, %c0_i32_0 : i32, i32, i32
  }
  func.func @transform_1(%arg0: i32) -> (i32, i32) {
    %c0_i32 = arith.constant 0 : i32
    %c0_i32_0 = arith.constant 0 : i32
    %c0_i32_1 = arith.constant 0 : i32
    return %c0_i32, %c0_i32_0 : i32, i32
  }
  func.func @transform_2(%arg0: i32) -> (i32, i32, i32) {
    %c0_i32 = arith.constant 0 : i32
    %c0_i32_0 = arith.constant 0 : i32
    %c0_i32_1 = arith.constant 0 : i32
    return %arg0, %c0_i32, %c0_i32_0 : i32, i32, i32
  }
  func.func @transform_3(%arg0: i32) -> (i32, i32, i32) {
    %c0_i32 = arith.constant 0 : i32
    %c0_i32_0 = arith.constant 0 : i32
    %c0_i32_1 = arith.constant 0 : i32
    return %arg0, %c0_i32, %c0_i32_0 : i32, i32, i32
  }
}

</mosaic_0001>

<bundles_post_ra>
// kernel: tpu_custom_call.1
= control target key start
LH: loop header
LB: loop body
LE: loop exit
PB: predicated region body
PF: predicated region fallthrough
CT: control target
= control target key end

     0   :  { %9 = vsyncpa [#allocation4], 0  ;;  %s1494_s0 = inlined_call_operand.vmem [shape: f32[2,64,16], index: 0, kind: input, shape index: {}]   ;;  %s1495_s1 = inlined_call_operand.vmem [shape: bf16[36,8], index: 1, kind: input, shape index: {}]   ;;  %s1496_s2 = inlined_call_operand.vmem [shape: f32[2,64,8], index: 2, kind: output, shape index: {0}]   ;;  %s1497_s3 = inlined_call_operand.hbm [shape: f32[2,2,8], index: 3, kind: output, shape index: {1}]  }
   0x1   :  { %11 = vsyncpa [#allocation4 + $0x1], 0  ;;  %s1085_s12 = smov 0   ;;  %s1087_s13 = smov 0  }
   0x2   :  { %s1089_s14 = smov 0   ;;  %s1091_s15 = smov 0  }
   0x3 LB: > { %s1106_s16 = sadd.s32 4294967295, %s1051_s15   ;;  %s885_s17 = sadd.s32 4294967294, %s1051_s15   ;;  %s1051_s15 = sphi %s1091_s15, %s1503_s15   ;;  %s1047_s14 = sphi %s1089_s14, %s1502_s14   ;;  %s1043_s13 = sphi %s1087_s13, %s1501_s13   ;;  %s1039_s12 = sphi %s1085_s12, %s1500_s12  }
   0x4   : > { %s1110_s18 = sadd.s32 1, %s1051_s15   ;;  %s97_s19 = sadd.s32 1, %s1047_s14 }
   0x5   : > { %s94_s20 = ssub.s32 %s1051_s15, %s1110_s18  ;;  %p107_p0 = scmp.ne.s32.totalorder %s1047_s14, %s1043_s13 }
   0x6   : > { %p95_p1 = scmp.eq.s32.totalorder %s94_s20, 0  ;;  %p108_p2 = scmp.eq.s32.totalorder %s1106_s16, 1 }
   0x7   : > { %p113_p3 = scmp.ne.s32.totalorder %s1043_s13, %s1039_s12  ;;  %p114_p4 = scmp.eq.s32.totalorder %s885_s17, 1 }
   0x8   : > { %s1121_s21 = scalar_select %p95_p1, %s1047_s14, %s97_s19  }
   0x9   : > { %p1123_p5 = por %p108_p2, %p107_p0  ;;  %p1127_p6 = por %p114_p4, %p113_p3 }
   0xa   : > { %p888_p7 = scmp.ge.s32.totalorder %s1051_s15, 1  ;;  %p143_p8 = scmp.lt.s32.totalorder %s1051_s15, 3 }
   0xc   : > { %p144_p9 = pnand %p888_p7, %p143_p8 }
   0xd   : > { %p172_p10 = scmp.lt.s32.totalorder (!%p144_p9), %s1106_s16, 1  ;;  %s1053_s29 = smov (!%p144_p9), 124   ;;  %vm274_vm0 = vcmask (!%p144_p9), 24576   ;;  %v1055_v24 = vmov (!%p144_p9), 0.0   ;;  %vm271_vm1 = vcmask (!%p144_p9), 31744   ;;  %vm290_vm2 = vcmask (!%p144_p9), 64544  }
   0xe   : > { %147 = sbr.rel (%p144_p9) target bundleno = 784 (0x310), region = 28  ;;  %s1054_s30 = smov (!%p144_p9), 120   ;;  %275 = vst.msk [vmem:[#allocation2 + $0x8] sm:$0x1] (!%p144_p9), %vm274_vm0, %v1055_v24  ;;  %276 = vst.msk [vmem:[#allocation2 + $0x10] sm:$0x1] (!%p144_p9), %vm274_vm0, %v1055_v24 }
   0xf   : > { %277 = vst.msk [vmem:[#allocation2 + $0x18] sm:$0x1] (!%p144_p9), %vm274_vm0, %v1055_v24  ;;  %278 = vst.msk [vmem:[#allocation2 + $0x20] sm:$0x1] (!%p144_p9), %vm274_vm0, %v1055_v24  ;;  %vm366_vm3 = vcmask (!%p144_p9), 122976   ;;  %vm282_vm4 = vcmask (!%p144_p9), 30720  }
  0x10   : > { %279 = vst.msk [vmem:[#allocation2 + $0x28] sm:$0x1] (!%p144_p9), %vm274_vm0, %v1055_v24  ;;  %280 = vst.msk [vmem:[#allocation2 + $0x30] sm:$0x1] (!%p144_p9), %vm274_vm0, %v1055_v24  ;;  %vm327_vm5 = vcmask (!%p144_p9), 97344   ;;  %s1056_s4 = smov (!%p144_p9), 4  }
  0x11   : > { %281 = vst.msk [vmem:[#allocation2 + $0x38] sm:$0x1] (!%p144_p9), %vm274_vm0, %v1055_v24  ;;  %s1057_s5 = smov (!%p144_p9), 8   ;;  %s1058_s6 = smov (!%p144_p9), 12   ;;  %v986_v39 = vld [vmem:[%s1495_s1] sm:$0xff] (!%p144_p9)   ;;  %v987_v40 = vld [vmem:[%s1495_s1 + $0x8] sm:$0xff] (!%p144_p9)  }
  0x12   : > { %272 = vst.msk [vmem:[#allocation2] sm:$0xff] (!%p144_p9), %vm271_vm1, %v1055_v24  ;;  %s1059_s7 = smov (!%p144_p9), 16   ;;  %s1060_s8 = smov (!%p144_p9), 20   ;;  %914 = vmatprep.subr.bf16.mxu0 (!%p144_p9), %v986_v39  ;;  %928 = vmatprep.subr.bf16.mxu1 (!%p144_p9), %v986_v39  ;;  %v988_v41 = vld [vmem:[%s1495_s1 + $0x10] ss:$0 sps:$4 sm:$0x33] (!%p144_p9)  }
  0x13   : > { %291 = vst.msk [vmem:[#allocation2] sm:$0xff] (!%p144_p9), %vm290_vm2, %v1055_v24  ;;  %s1061_s9 = smov (!%p144_p9), 24   ;;  %s1062_s10 = smov (!%p144_p9), 28   ;;  %915 = vmatpush3.bf16.msra.mxu0 (!%p144_p9), %v986_v39  ;;  %931 = vmatpush3.bf16.msra.mxu1 (!%p144_p9), %v986_v39  ;;  %vm638_vm6 = vcmask (!%p144_p9), 1041408   ;;  %vm329_vm7 = vcmask (!%p144_p9), 90176   ;;  %vm358_vm8 = vcmask (!%p144_p9), 97345  }
  0x14   : > { %328 = vst.msk [vmem:[#allocation2] sm:$0xff] (!%p144_p9), %vm327_vm5, %v1055_v24  ;;  %s1063_s26 = smov (!%p144_p9), 32   ;;  %916 = vmatprep.subr.bf16.mxu0 (!%p144_p9), %v987_v40  ;;  %929 = vmatprep.subr.bf16.mxu1 (!%p144_p9), %v987_v40  ;;  %v640_v42 = vsel (!%p144_p9), %vm638_vm6, %v988_v41, 0  ;;  %vm400_vm9 = vcmask (!%p144_p9), 129120   ;;  %vm433_vm10 = vcmask (!%p144_p9), 162944   ;;  %vm442_vm11 = vcmask (!%p144_p9), 188576  }
  0x15   : > { %s1135_s24 = scalar_select %p172_p10, %s1106_s16, 1  ;;  %367 = vst.msk [vmem:[#allocation2] sm:$0x1] %vm366_vm3, %v1055_v24  ;;  %vm475_vm12 = vcmask 195745   ;;  %vm487_vm13 = vcmask 221376   ;;  %vm516_vm14 = vcmask 227520  }
  0x16   : > { %vm524_vm15 = vcmask 261344   ;;  %vm556_vm0 = vcmask 286976   ;;  %vm585_vm1 = vcmask 294145   ;;  %vm707_vm5 = vcmask 64512  }
  0x17   : > { %s905_s25 = sshll.u32 %s1135_s24, 6  ;;  %917 = vmatpush3.bf16.msra.mxu0 %v987_v40  ;;  %932 = vmatpush3.bf16.msra.mxu1 %v987_v40  ;;  %s169_s24 = sand.u32 1, %s1043_s13  }
  0x18   : > { %s176_s28 = scalar_lea.vmem %s1494_s0, %s905_s25  ;;  %934 = vmatprep.subr.msk.bf16.mxu0 %vm638_vm6, %v988_v41  ;;  %935 = vmatprep.subr.msk.bf16.mxu1 %vm638_vm6, %v988_v41  ;;  %vm775_vm6 = vcmask 1040384   ;;  %s785_s11 = scalar_lea.sflag [#allocation4], %s169_s24 }
  0x19   : > { %v183_v0 = vld [vmem:[%s176_s28] sm:$0xff]  ;;  %v185_v1 = vld [vmem:[%s176_s28 + $0x10] sm:$0xff]  ;;  %v184_v2 = vld [vmem:[%s176_s28 + $0x8] sm:$0xff] }
  0x1a   : > { %199 = vrot.lane.b32.xlu0 %v183_v0, %s1053_s29  ;;  %203 = vrot.lane.b32.xlu1 %v185_v1, %s1053_s29  ;;  %v186_v3 = vld [vmem:[%s176_s28 + $0x18] sm:$0xff]  ;;  %v187_v4 = vld [vmem:[%s176_s28 + $0x20] sm:$0xff] }
  0x1b   : > { %v188_v5 = vld [vmem:[%s176_s28 + $0x28] sm:$0xff]  ;;  %v189_v6 = vld [vmem:[%s176_s28 + $0x30] sm:$0xff]  ;;  %v190_v7 = vld [vmem:[%s176_s28 + $0x38] sm:$0xff]  ;;  %919 = vmatpush3.bf16.msra.mxu0 %v640_v42  ;;  %933 = vmatpush3.bf16.msra.mxu1 %v640_v42 }
  0x1e   : > { %201 = vrot.lane.b32.xlu0 %v184_v2, %s1053_s29  ;;  %205 = vrot.lane.b32.xlu1 %v186_v3, %s1053_s29 }
  0x22   : > { %207 = vrot.lane.b32.xlu0 %v187_v4, %s1053_s29  ;;  %209 = vrot.lane.b32.xlu1 %v188_v5, %s1053_s29 }
  0x26   : > { %211 = vrot.lane.b32.xlu0 %v189_v6, %s1053_s29  ;;  %213 = vrot.lane.b32.xlu1 %v190_v7, %s1053_s29 }
  0x8c   : > { %v200_v8 = vpop.permute.xlu0 %199  ;;  %v204_v9 = vpop.permute.xlu1 %203 }
  0x8d   : > { %v223_v10 = vmax.f32 %v183_v0, %v200_v8  ;;  %v225_v11 = vmax.f32 %v185_v1, %v204_v9 }
  0x8f   : > { %239 = vrot.lane.b32.xlu0 %v223_v10, %s1054_s30 }
  0x90   : > { %v202_v12 = vpop.permute.xlu0 %201  ;;  %v206_v13 = vpop.permute.xlu1 %205 }
  0x91   : > { %v224_v14 = vmax.f32 %v184_v2, %v202_v12  ;;  %v226_v15 = vmax.f32 %v186_v3, %v206_v13 }
  0x93   : > { %243 = vrot.lane.b32.xlu0 %v225_v11, %s1054_s30  ;;  %241 = vrot.lane.b32.xlu1 %v224_v14, %s1054_s30 }
  0x94   : > { %v208_v16 = vpop.permute.xlu0 %207  ;;  %v210_v17 = vpop.permute.xlu1 %209 }
  0x95   : > { %v227_v18 = vmax.f32 %v187_v4, %v208_v16  ;;  %v228_v19 = vmax.f32 %v188_v5, %v210_v17 }
  0x97   : > { %245 = vrot.lane.b32.xlu1 %v226_v15, %s1054_s30  ;;  %247 = vrot.lane.b32.xlu0 %v227_v18, %s1054_s30 }
  0x98   : > { %v212_v20 = vpop.permute.xlu0 %211  ;;  %v214_v21 = vpop.permute.xlu1 %213 }
  0x99   : > { %v229_v22 = vmax.f32 %v189_v6, %v212_v20  ;;  %v1143_v23 = vmax.f32 %v190_v7, %v214_v21 }
  0x9b   : > { %249 = vrot.lane.b32.xlu1 %v228_v19, %s1054_s30  ;;  %251 = vrot.lane.b32.xlu0 %v229_v22, %s1054_s30 }
  0x9f   : > { %253 = vrot.lane.b32.xlu1 %v1143_v23, %s1054_s30 }
 0x101   : > { %v240_v25 = vpop.permute.xlu0 %239 }
 0x102   : > { %v263_v26 = vmax.f32 %v223_v10, %v240_v25 }
 0x104   : > { %299 = vrot.lane.b32.xlu0 %v263_v26, %s1056_s4  ;;  %283 = vst.msk [vmem:[#allocation2 + $0x9] sm:$0x7f] %vm282_vm4, %v263_v26 }
 0x105   : > { %v242_v27 = vpop.permute.xlu1 %241  ;;  %v244_v28 = vpop.permute.xlu0 %243 }
 0x106   : > { %v264_v29 = vmax.f32 %v224_v14, %v242_v27  ;;  %v265_v30 = vmax.f32 %v225_v11, %v244_v28 }
 0x108   : > { %301 = vrot.lane.b32.xlu1 %v264_v29, %s1056_s4  ;;  %303 = vrot.lane.b32.xlu0 %v265_v30, %s1056_s4  ;;  %284 = vst.msk [vmem:[#allocation2 + $0x11] sm:$0x7f] %vm282_vm4, %v264_v29  ;;  %285 = vst.msk [vmem:[#allocation2 + $0x19] sm:$0x7f] %vm282_vm4, %v265_v30 }
 0x109   : > { %v246_v31 = vpop.permute.xlu1 %245  ;;  %v248_v32 = vpop.permute.xlu0 %247 }
 0x10a   : > { %v1165_v33 = vmax.f32 %v226_v15, %v246_v31  ;;  %v1167_v34 = vmax.f32 %v227_v18, %v248_v32 }
 0x10c   : > { %337 = vrot.lane.b32.xlu1 %v263_v26, %s1057_s5  ;;  %339 = vrot.lane.b32.xlu0 %v264_v29, %s1057_s5  ;;  %286 = vst.msk [vmem:[#allocation2 + $0x21] sm:$0x7f] %vm282_vm4, %v1165_v33  ;;  %287 = vst.msk [vmem:[#allocation2 + $0x29] sm:$0x7f] %vm282_vm4, %v1167_v34 }
 0x10d   : > { %v250_v35 = vpop.permute.xlu1 %249  ;;  %v252_v36 = vpop.permute.xlu0 %251 }
 0x10e   : > { %v1175_v37 = vmax.f32 %v228_v19, %v250_v35  ;;  %v1177_v38 = vmax.f32 %v229_v22, %v252_v36 }
 0x110   : > { %341 = vrot.lane.b32.xlu1 %v265_v30, %s1057_s5  ;;  %376 = vrot.lane.b32.xlu0 %v263_v26, %s1058_s6  ;;  %288 = vst.msk [vmem:[#allocation2 + $0x31] sm:$0x7f] %vm282_vm4, %v1175_v37  ;;  %289 = vst.msk [vmem:[#allocation2 + $0x39] sm:$0x7f] %vm282_vm4, %v1177_v38  ;;  %vm625_vm4 = vcmask 293888  }
 0x111   : > { %v254_v43 = vpop.permute.xlu1 %253 }
 0x112   : > { %v270_v44 = vmax.f32 %v1143_v23, %v254_v43 }
 0x114   : > { %378 = vrot.lane.b32.xlu1 %v264_v29, %s1058_s6  ;;  %380 = vrot.lane.b32.xlu0 %v265_v30, %s1058_s6 }
 0x118   : > { %382 = vrot.lane.b32.xlu1 %v1165_v33, %s1058_s6  ;;  %409 = vrot.lane.b32.xlu0 %v263_v26, %s1059_s7 }
 0x11c   : > { %411 = vrot.lane.b32.xlu1 %v264_v29, %s1059_s7  ;;  %413 = vrot.lane.b32.xlu0 %v265_v30, %s1059_s7 }
 0x120   : > { %415 = vrot.lane.b32.xlu1 %v1165_v33, %s1059_s7  ;;  %451 = vrot.lane.b32.xlu0 %v263_v26, %s1060_s8 }
 0x124   : > { %453 = vrot.lane.b32.xlu1 %v264_v29, %s1060_s8  ;;  %455 = vrot.lane.b32.xlu0 %v265_v30, %s1060_s8 }
 0x128   : > { %457 = vrot.lane.b32.xlu1 %v1165_v33, %s1060_s8  ;;  %495 = vrot.lane.b32.xlu0 %v264_v29, %s1061_s9 }
 0x12c   : > { %497 = vrot.lane.b32.xlu1 %v265_v30, %s1061_s9  ;;  %499 = vrot.lane.b32.xlu0 %v1165_v33, %s1061_s9 }
 0x130   : > { %526 = vrot.lane.b32.xlu0 %v264_v29, %s1062_s10  ;;  %501 = vrot.lane.b32.xlu1 %v1167_v34, %s1061_s9 }
 0x134   : > { %530 = vrot.lane.b32.xlu0 %v1165_v33, %s1062_s10  ;;  %528 = vrot.lane.b32.xlu1 %v265_v30, %s1062_s10 }
 0x138   : > { %564 = vrot.lane.b32.xlu0 %v264_v29, %s1063_s26  ;;  %532 = vrot.lane.b32.xlu1 %v1167_v34, %s1062_s10 }
 0x13c   : > { %305 = vrot.lane.b32.xlu0 %v1165_v33, %s1056_s4  ;;  %566 = vrot.lane.b32.xlu1 %v265_v30, %s1063_s26 }
 0x140   : > { %568 = vrot.lane.b32.xlu0 %v1165_v33, %s1063_s26  ;;  %307 = vrot.lane.b32.xlu1 %v1167_v34, %s1056_s4 }
 0x144   : > { %309 = vrot.lane.b32.xlu0 %v1175_v37, %s1056_s4  ;;  %570 = vrot.lane.b32.xlu1 %v1167_v34, %s1063_s26 }
 0x148   : > { %343 = vrot.lane.b32.xlu0 %v1165_v33, %s1057_s5  ;;  %311 = vrot.lane.b32.xlu1 %v1177_v38, %s1056_s4  ;;  %s181_s4 = scalar_lea.vmem %s1496_s2, %s905_s25  ;;  %s889_s25 = sshll.u32 %s169_s24, 1 }
 0x14c   : > { %347 = vrot.lane.b32.xlu0 %v1175_v37, %s1057_s5  ;;  %345 = vrot.lane.b32.xlu1 %v1167_v34, %s1057_s5 }
 0x150   : > { %384 = vrot.lane.b32.xlu0 %v1167_v34, %s1058_s6  ;;  %349 = vrot.lane.b32.xlu1 %v1177_v38, %s1057_s5  ;;  %s902_s5 = sshll.u32 %s1106_s16, 5  ;;  %s1064_s16 = smov [#allocation3]  }
 0x151   : > { %s993_s19 = sshll.u32 %s1064_s16, 4  ;;  %s994_s19 = int_to_ptr.vmem [resolvable:$false] %s993_s19 }
 0x152   : > { %s995_s20 = scalar_lea.vmem %s994_s19, 64 }
 0x154   : > { %388 = vrot.lane.b32.xlu0 %v1177_v38, %s1058_s6  ;;  %386 = vrot.lane.b32.xlu1 %v1175_v37, %s1058_s6 }
 0x158   : > { %417 = vrot.lane.b32.xlu0 %v1167_v34, %s1059_s7  ;;  %390 = vrot.lane.b32.xlu1 %v270_v44, %s1058_s6  ;;  %s171_s6 = scalar_lea.vmem [#allocation3], %s889_s25 }
 0x15c   : > { %421 = vrot.lane.b32.xlu0 %v1177_v38, %s1059_s7  ;;  %419 = vrot.lane.b32.xlu1 %v1175_v37, %s1059_s7 }
 0x160   : > { %459 = vrot.lane.b32.xlu0 %v1167_v34, %s1060_s8  ;;  %423 = vrot.lane.b32.xlu1 %v270_v44, %s1059_s7  ;;  %s801_s7 = sshll.u32 %s171_s6, 4  ;;  %s1454_s7 = int_to_ptr.vmem [resolvable:$true] %s801_s7 }
 0x161   : > { %s989_s17 = scalar_lea.vmem %s1454_s7, 32  ;;  %p996_p0 = scmp.lt.s32.totalorder %s1454_s7, %s994_s19 }
 0x162   : > { %p990_p11 = scmp.ne.s32.totalorder %s1454_s7, %s989_s17  ;;  %p997_p1 = scmp.lt.s32.totalorder %s995_s20, %s989_s17 }
 0x164   : > { %463 = vrot.lane.b32.xlu0 %v1177_v38, %s1060_s8  ;;  %461 = vrot.lane.b32.xlu1 %v1175_v37, %s1060_s8  ;;  %p991_p12 = pnand %p990_p11, %p1123_p5  ;;  %p998_p2 = por %p997_p1, %p996_p0 }
 0x166   : > { %p992_p13 = pneg %p991_p12 }
 0x168   : > { %503 = vrot.lane.b32.xlu0 %v1175_v37, %s1061_s9  ;;  %465 = vrot.lane.b32.xlu1 %v270_v44, %s1060_s8  ;;  %p999_p3 = pnand %p998_p2, %p992_p13 }
 0x16c   : > { %507 = vrot.lane.b32.xlu0 %v270_v44, %s1061_s9  ;;  %505 = vrot.lane.b32.xlu1 %v1177_v38, %s1061_s9 }
 0x170   : > { %536 = vrot.lane.b32.xlu0 %v1177_v38, %s1062_s10  ;;  %534 = vrot.lane.b32.xlu1 %v1175_v37, %s1062_s10 }
 0x174   : > { %572 = vrot.lane.b32.xlu0 %v1175_v37, %s1063_s26  ;;  %538 = vrot.lane.b32.xlu1 %v270_v44, %s1062_s10  ;;  %s1452_s10 = scalar_lea.hbm %s1497_s3, %s902_s5 }
 0x176   : > { %v300_v45 = vpop.permute.xlu0 %299 }
 0x177   : > { %320 = vst.msk [vmem:[#allocation2 + $0x8] sm:$0xff] %vm290_vm2, %v300_v45 }
 0x178   : > { %330 = vst.msk [vmem:[#allocation2 + $0xf] sm:$0x1] %vm329_vm7, %v1055_v24  ;;  %576 = vrot.lane.b32.xlu0 %v270_v44, %s1063_s26  ;;  %574 = vrot.lane.b32.xlu1 %v1177_v38, %s1063_s26 }
 0x17a   : > { %v302_v46 = vpop.permute.xlu1 %301  ;;  %v304_v47 = vpop.permute.xlu0 %303 }
 0x17b   : > { %321 = vst.msk [vmem:[#allocation2 + $0x10] sm:$0xff] %vm290_vm2, %v302_v46  ;;  %322 = vst.msk [vmem:[#allocation2 + $0x18] sm:$0xff] %vm290_vm2, %v304_v47 }
 0x17c   : > { %331 = vst.msk [vmem:[#allocation2 + $0x17] sm:$0x1] %vm329_vm7, %v1055_v24  ;;  %332 = vst.msk [vmem:[#allocation2 + $0x1f] sm:$0x1] %vm329_vm7, %v1055_v24 }
 0x17e   : > { %v338_v48 = vpop.permute.xlu1 %337  ;;  %v340_v49 = vpop.permute.xlu0 %339 }
 0x17f   : > { %359 = vst.msk [vmem:[#allocation2 + $0x7] sm:$0xfe] %vm358_vm8, %v338_v48  ;;  %360 = vst.msk [vmem:[#allocation2 + $0xf] sm:$0xfe] %vm358_vm8, %v340_v49 }
 0x180   : > { %368 = vst.msk [vmem:[#allocation2 + $0x8] sm:$0x1] %vm366_vm3, %v1055_v24  ;;  %369 = vst.msk [vmem:[#allocation2 + $0x10] sm:$0x1] %vm366_vm3, %v1055_v24 }
 0x182   : > { %v342_v50 = vpop.permute.xlu1 %341  ;;  %v377_v51 = vpop.permute.xlu0 %376 }
 0x183   : > { %361 = vst.msk [vmem:[#allocation2 + $0x17] sm:$0xfe] %vm358_vm8, %v342_v50 }
 0x184   : > { %401 = vst.msk [vmem:[#allocation2 + $0x1] sm:$0x7f] %vm400_vm9, %v377_v51 }
 0x185   : > { %370 = vst.msk [vmem:[#allocation2 + $0x18] sm:$0x1] %vm366_vm3, %v1055_v24 }
 0x186   : > { %v379_v52 = vpop.permute.xlu1 %378  ;;  %v381_v53 = vpop.permute.xlu0 %380 }
 0x187   : > { %402 = vst.msk [vmem:[#allocation2 + $0x9] sm:$0x7f] %vm400_vm9, %v379_v52  ;;  %403 = vst.msk [vmem:[#allocation2 + $0x11] sm:$0x7f] %vm400_vm9, %v381_v53 }
 0x18a   : > { %v383_v54 = vpop.permute.xlu1 %382  ;;  %v410_v55 = vpop.permute.xlu0 %409 }
 0x18b   : > { %404 = vst.msk [vmem:[#allocation2 + $0x19] sm:$0x7f] %vm400_vm9, %v383_v54 }
 0x18c   : > { %434 = vst.msk [vmem:[#allocation2] sm:$0xff] %vm433_vm10, %v410_v55 }
 0x18d   : > { %443 = vst.msk [vmem:[#allocation2 + $0x7] sm:$0x1] %vm442_vm11, %v1055_v24 }
 0x18e   : > { %v412_v56 = vpop.permute.xlu1 %411  ;;  %v414_v57 = vpop.permute.xlu0 %413 }
 0x18f   : > { %435 = vst.msk [vmem:[#allocation2 + $0x8] sm:$0xff] %vm433_vm10, %v412_v56  ;;  %436 = vst.msk [vmem:[#allocation2 + $0x10] sm:$0xff] %vm433_vm10, %v414_v57 }
 0x190   : > { %444 = vst.msk [vmem:[#allocation2 + $0xf] sm:$0x1] %vm442_vm11, %v1055_v24  ;;  %445 = vst.msk [vmem:[#allocation2 + $0x17] sm:$0x1] %vm442_vm11, %v1055_v24 }
 0x192   : > { %v416_v58 = vpop.permute.xlu1 %415  ;;  %v452_v59 = vpop.permute.xlu0 %451 }
 0x193   : > { %437 = vst.msk [vmem:[#allocation2 + $0x18] sm:$0xff] %vm433_vm10, %v416_v58 }
 0x194   : > { %476 = vst.msk [vmem:[#allocation2 - $0x1] sm:$0xfe] %vm475_vm12, %v452_v59 }
 0x195   : > { %446 = vst.msk [vmem:[#allocation2 + $0x1f] sm:$0x1] %vm442_vm11, %v1055_v24 }
 0x196   : > { %488 = vst.msk [vmem:[#allocation2] sm:$0x1] %vm487_vm13, %v1055_v24  ;;  %v454_v60 = vpop.permute.xlu1 %453  ;;  %v456_v61 = vpop.permute.xlu0 %455 }
 0x197   : > { %477 = vst.msk [vmem:[#allocation2 + $0x7] sm:$0xfe] %vm475_vm12, %v454_v60  ;;  %478 = vst.msk [vmem:[#allocation2 + $0xf] sm:$0xfe] %vm475_vm12, %v456_v61 }
 0x198   : > { %489 = vst.msk [vmem:[#allocation2 + $0x8] sm:$0x1] %vm487_vm13, %v1055_v24  ;;  %490 = vst.msk [vmem:[#allocation2 + $0x10] sm:$0x1] %vm487_vm13, %v1055_v24 }
 0x19a   : > { %v458_v62 = vpop.permute.xlu1 %457  ;;  %v496_v63 = vpop.permute.xlu0 %495 }
 0x19b   : > { %479 = vst.msk [vmem:[#allocation2 + $0x17] sm:$0xfe] %vm475_vm12, %v458_v62 }
 0x19c   : > { %517 = vst.msk [vmem:[#allocation2 + $0x1] sm:$0x7f] %vm516_vm14, %v496_v63 }
 0x19d   : > { %491 = vst.msk [vmem:[#allocation2 + $0x18] sm:$0x1] %vm487_vm13, %v1055_v24 }
 0x19e   : > { %v498_v0 = vpop.permute.xlu1 %497  ;;  %v500_v1 = vpop.permute.xlu0 %499 }
 0x19f   : > { %518 = vst.msk [vmem:[#allocation2 + $0x9] sm:$0x7f] %vm516_vm14, %v498_v0  ;;  %519 = vst.msk [vmem:[#allocation2 + $0x11] sm:$0x7f] %vm516_vm14, %v500_v1 }
 0x1a2   : > { %v502_v2 = vpop.permute.xlu1 %501  ;;  %v527_v3 = vpop.permute.xlu0 %526 }
 0x1a3   : > { %520 = vst.msk [vmem:[#allocation2 + $0x19] sm:$0x7f] %vm516_vm14, %v502_v2 }
 0x1a4   : > { %547 = vst.msk [vmem:[#allocation2] sm:$0xff] %vm524_vm15, %v527_v3 }
 0x1a5   : > { %557 = vst.msk [vmem:[#allocation2 + $0x7] sm:$0x1] %vm556_vm0, %v1055_v24 }
 0x1a6   : > { %v529_v4 = vpop.permute.xlu1 %528  ;;  %v531_v5 = vpop.permute.xlu0 %530 }
 0x1a7   : > { %548 = vst.msk [vmem:[#allocation2 + $0x8] sm:$0xff] %vm524_vm15, %v529_v4  ;;  %549 = vst.msk [vmem:[#allocation2 + $0x10] sm:$0xff] %vm524_vm15, %v531_v5 }
 0x1a8   : > { %558 = vst.msk [vmem:[#allocation2 + $0xf] sm:$0x1] %vm556_vm0, %v1055_v24  ;;  %559 = vst.msk [vmem:[#allocation2 + $0x17] sm:$0x1] %vm556_vm0, %v1055_v24 }
 0x1aa   : > { %v533_v6 = vpop.permute.xlu1 %532  ;;  %v565_v7 = vpop.permute.xlu0 %564 }
 0x1ab   : > { %550 = vst.msk [vmem:[#allocation2 + $0x18] sm:$0xff] %vm524_vm15, %v533_v6 }
 0x1ac   : > { %586 = vst.msk [vmem:[#allocation2 - $0x1] sm:$0xfe] %vm585_vm1, %v565_v7 }
 0x1ad   : > { %560 = vst.msk [vmem:[#allocation2 + $0x1f] sm:$0x1] %vm556_vm0, %v1055_v24 }
 0x1ae   : > { %v567_v8 = vpop.permute.xlu1 %566  ;;  %v306_v9 = vpop.permute.xlu0 %305 }
 0x1af   : > { %587 = vst.msk [vmem:[#allocation2 + $0x7] sm:$0xfe] %vm585_vm1, %v567_v8 }
 0x1b0   : > { %323 = vst.msk [vmem:[#allocation2 + $0x20] sm:$0xff] %vm290_vm2, %v306_v9 }
 0x1b1   : > { %333 = vst.msk [vmem:[#allocation2 + $0x27] sm:$0x1] %vm329_vm7, %v1055_v24 }
 0x1b2   : > { %v308_v10 = vpop.permute.xlu1 %307  ;;  %v569_v11 = vpop.permute.xlu0 %568 }
 0x1b3   : > { %324 = vst.msk [vmem:[#allocation2 + $0x28] sm:$0xff] %vm290_vm2, %v308_v10  ;;  %v593_v14 = vld [vmem:[#allocation2] sm:$0xff] }
 0x1b4   : > { %588 = vst.msk [vmem:[#allocation2 + $0xf] sm:$0xfe] %vm585_vm1, %v569_v11 }
 0x1b5   : > { %334 = vst.msk [vmem:[#allocation2 + $0x2f] sm:$0x1] %vm329_vm7, %v1055_v24 }
 0x1b6   : > { %v571_v12 = vpop.permute.xlu1 %570  ;;  %v310_v13 = vpop.permute.xlu0 %309  ;;  %v594_v15 = vld [vmem:[#allocation2 + $0x8] sm:$0xff] }
 0x1b7   : > { %589 = vst.msk [vmem:[#allocation2 + $0x17] sm:$0xfe] %vm585_vm1, %v571_v12  ;;  %v601_v16 = vpack.c.bf16 %v594_v15, %v593_v14 }
 0x1b8   : > { %325 = vst.msk [vmem:[#allocation2 + $0x30] sm:$0xff] %vm290_vm2, %v310_v13 }
 0x1b9   : > { %335 = vst.msk [vmem:[#allocation2 + $0x37] sm:$0x1] %vm329_vm7, %v1055_v24  ;;  %920 = vmatprep.mubr.msk.bf16.mxu0 %vm625_vm4, %v601_v16 }
 0x1ba   : > { %v312_v17 = vpop.permute.xlu1 %311  ;;  %v344_v18 = vpop.permute.xlu0 %343 }
 0x1bb   : > { %326 = vst.msk [vmem:[#allocation2 + $0x38] sm:$0xff] %vm290_vm2, %v312_v17  ;;  %v595_v21 = vld [vmem:[#allocation2 + $0x10] sm:$0xff]  ;;  %vm485_vm2 = vcmask 228544  }
 0x1bc   : > { %362 = vst.msk [vmem:[#allocation2 + $0x1f] sm:$0xfe] %vm358_vm8, %v344_v18 }
 0x1bd   : > { %336 = vst.msk [vmem:[#allocation2 + $0x3f] sm:$0x1] %vm329_vm7, %v1055_v24  ;;  %vm777_vm7 = vcmask 58368  }
 0x1be   : > { %371 = vst.msk [vmem:[#allocation2 + $0x20] sm:$0x1] %vm366_vm3, %v1055_v24  ;;  %v346_v19 = vpop.permute.xlu1 %345  ;;  %v348_v20 = vpop.permute.xlu0 %347  ;;  %v596_v22 = vld [vmem:[#allocation2 + $0x18] sm:$0xff] }
 0x1bf   : > { %363 = vst.msk [vmem:[#allocation2 + $0x27] sm:$0xfe] %vm358_vm8, %v346_v19  ;;  %364 = vst.msk [vmem:[#allocation2 + $0x2f] sm:$0xfe] %vm358_vm8, %v348_v20  ;;  %v602_v23 = vpack.c.bf16 %v596_v22, %v595_v21 }
 0x1c0   : > { %372 = vst.msk [vmem:[#allocation2 + $0x28] sm:$0x1] %vm366_vm3, %v1055_v24  ;;  %373 = vst.msk [vmem:[#allocation2 + $0x30] sm:$0x1] %vm366_vm3, %v1055_v24 }
 0x1c1   : > { %921 = vmatmul.mubr.msk.bf16.vlgmr.msra.gmra.mrb[0].mxu0 %vm625_vm4, %v602_v23 }
 0x1c2   : > { %v350_v25 = vpop.permute.xlu1 %349  ;;  %v385_v26 = vpop.permute.xlu0 %384 }
 0x1c3   : > { %365 = vst.msk [vmem:[#allocation2 + $0x37] sm:$0xfe] %vm358_vm8, %v350_v25 }
 0x1c4   : > { %405 = vst.msk [vmem:[#allocation2 + $0x21] sm:$0x7f] %vm400_vm9, %v385_v26 }
 0x1c5   : > { %374 = vst.msk [vmem:[#allocation2 + $0x38] sm:$0x1] %vm366_vm3, %v1055_v24  ;;  %vm554_vm3 = vcmask 294144  }
 0x1c6   : > { %v387_v27 = vpop.permute.xlu1 %386  ;;  %v389_v28 = vpop.permute.xlu0 %388 }
 0x1c7   : > { %406 = vst.msk [vmem:[#allocation2 + $0x29] sm:$0x7f] %vm400_vm9, %v387_v27  ;;  %407 = vst.msk [vmem:[#allocation2 + $0x31] sm:$0x7f] %vm400_vm9, %v389_v28 }
 0x1ca   : > { %v391_v29 = vpop.permute.xlu1 %390  ;;  %v418_v30 = vpop.permute.xlu0 %417 }
 0x1cb   : > { %408 = vst.msk [vmem:[#allocation2 + $0x39] sm:$0x7f] %vm400_vm9, %v391_v29 }
 0x1cc   : > { %438 = vst.msk [vmem:[#allocation2 + $0x20] sm:$0xff] %vm433_vm10, %v418_v30 }
 0x1cd   : > { %447 = vst.msk [vmem:[#allocation2 + $0x27] sm:$0x1] %vm442_vm11, %v1055_v24 }
 0x1ce   : > { %v420_v31 = vpop.permute.xlu1 %419  ;;  %v422_v32 = vpop.permute.xlu0 %421 }
 0x1cf   : > { %439 = vst.msk [vmem:[#allocation2 + $0x28] sm:$0xff] %vm433_vm10, %v420_v31  ;;  %440 = vst.msk [vmem:[#allocation2 + $0x30] sm:$0xff] %vm433_vm10, %v422_v32 }
 0x1d0   : > { %448 = vst.msk [vmem:[#allocation2 + $0x2f] sm:$0x1] %vm442_vm11, %v1055_v24  ;;  %449 = vst.msk [vmem:[#allocation2 + $0x37] sm:$0x1] %vm442_vm11, %v1055_v24 }
 0x1d2   : > { %v424_v33 = vpop.permute.xlu1 %423  ;;  %v460_v34 = vpop.permute.xlu0 %459 }
 0x1d3   : > { %441 = vst.msk [vmem:[#allocation2 + $0x38] sm:$0xff] %vm433_vm10, %v424_v33 }
 0x1d4   : > { %480 = vst.msk [vmem:[#allocation2 + $0x1f] sm:$0xfe] %vm475_vm12, %v460_v34 }
 0x1d5   : > { %450 = vst.msk [vmem:[#allocation2 + $0x3f] sm:$0x1] %vm442_vm11, %v1055_v24 }
 0x1d6   : > { %492 = vst.msk [vmem:[#allocation2 + $0x20] sm:$0x1] %vm487_vm13, %v1055_v24  ;;  %v462_v35 = vpop.permute.xlu1 %461  ;;  %v464_v36 = vpop.permute.xlu0 %463 }
 0x1d7   : > { %481 = vst.msk [vmem:[#allocation2 + $0x27] sm:$0xfe] %vm475_vm12, %v462_v35  ;;  %482 = vst.msk [vmem:[#allocation2 + $0x2f] sm:$0xfe] %vm475_vm12, %v464_v36 }
 0x1d8   : > { %493 = vst.msk [vmem:[#allocation2 + $0x28] sm:$0x1] %vm487_vm13, %v1055_v24  ;;  %494 = vst.msk [vmem:[#allocation2 + $0x30] sm:$0x1] %vm487_vm13, %v1055_v24 }
 0x1da   : > { %v466_v37 = vpop.permute.xlu1 %465  ;;  %v504_v38 = vpop.permute.xlu0 %503 }
 0x1db   : > { %483 = vst.msk [vmem:[#allocation2 + $0x37] sm:$0xfe] %vm475_vm12, %v466_v37 }
 0x1dc   : > { %521 = vst.msk [vmem:[#allocation2 + $0x21] sm:$0x7f] %vm516_vm14, %v504_v38 }
 0x1dd   : > { %486 = vst.msk [vmem:[#allocation2 + $0x38] sm:$0xff] %vm485_vm2, %v1055_v24 }
 0x1de   : > { %525 = vst.msk [vmem:[#allocation2 + $0x38] sm:$0xff] %vm524_vm15, %v1055_v24  ;;  %v506_v39 = vpop.permute.xlu1 %505  ;;  %v508_v40 = vpop.permute.xlu0 %507 }
 0x1df   : > { %555 = vst.msk [vmem:[#allocation2 + $0x38] sm:$0xff] %vm554_vm3, %v1055_v24 }
 0x1e0   : > { %522 = vst.msk [vmem:[#allocation2 + $0x29] sm:$0x7f] %vm516_vm14, %v506_v39  ;;  %523 = vst.msk [vmem:[#allocation2 + $0x31] sm:$0x7f] %vm516_vm14, %v508_v40 }
 0x1e2   : > { %v535_v41 = vpop.permute.xlu1 %534  ;;  %v537_v42 = vpop.permute.xlu0 %536 }
 0x1e3   : > { %551 = vst.msk [vmem:[#allocation2 + $0x20] sm:$0xff] %vm524_vm15, %v535_v41  ;;  %552 = vst.msk [vmem:[#allocation2 + $0x28] sm:$0xff] %vm524_vm15, %v537_v42 }
 0x1e4   : > { %561 = vst.msk [vmem:[#allocation2 + $0x27] sm:$0x1] %vm556_vm0, %v1055_v24  ;;  %562 = vst.msk [vmem:[#allocation2 + $0x2f] sm:$0x1] %vm556_vm0, %v1055_v24 }
 0x1e6   : > { %v539_v43 = vpop.permute.xlu1 %538  ;;  %v573_v44 = vpop.permute.xlu0 %572  ;;  %v600_v47 = vld [vmem:[#allocation2 + $0x38] sm:$0xff] }
 0x1e7   : > { %553 = vst.msk [vmem:[#allocation2 + $0x30] sm:$0xff] %vm524_vm15, %v539_v43 }
 0x1e8   : > { %590 = vst.msk [vmem:[#allocation2 + $0x1f] sm:$0xfe] %vm585_vm1, %v573_v44 }
 0x1e9   : > { %563 = vst.msk [vmem:[#allocation2 + $0x37] sm:$0x1] %vm556_vm0, %v1055_v24 }
 0x1ea   : > { %v575_v45 = vpop.permute.xlu1 %574  ;;  %v577_v46 = vpop.permute.xlu0 %576 }
 0x1eb   : > { %591 = vst.msk [vmem:[#allocation2 + $0x27] sm:$0xfe] %vm585_vm1, %v575_v45  ;;  %592 = vst.msk [vmem:[#allocation2 + $0x2f] sm:$0xfe] %vm585_vm1, %v577_v46 }
 0x1ef   : > { %v597_v48 = vld [vmem:[#allocation2 + $0x20] sm:$0xff] }
 0x1f2   : > { %v598_v49 = vld [vmem:[#allocation2 + $0x28] sm:$0xff]  ;;  %v599_v50 = vld [vmem:[#allocation2 + $0x30] sm:$0xff] }
 0x1f3   : > { %v603_v51 = vpack.c.bf16 %v598_v49, %v597_v48  ;;  %v604_v52 = vpack.c.bf16 %v600_v47, %v599_v50 }
 0x1f5   : > { %924 = vmatprep.mubr.msk.bf16.mxu1 %vm625_vm4, %v603_v51 }
 0x1f6   : > { %925 = vmatmul.mubr.msk.bf16.vlgmr.msra.gmra.mrb[0].mxu1 %vm625_vm4, %v604_v52 }
 0x294   : > { %v922_v24 = vpop.f32.mrb[0].mxu0 }
 0x295   : > { %710 = vst.msk [vmem:[%s181_s4 + $0x10] sm:$0xff] %vm707_vm5, %v922_v24  ;;  %v676_v53 = vpop.f32.mrb[1].mxu0  ;;  %v719_v59 = vsel %vm707_vm5, %v922_v24, 0.0 }
 0x296   : > { %708 = vst.msk [vmem:[%s181_s4] sm:$0xff] %vm707_vm5, %v676_v53  ;;  %v923_v54 = vpop.f32.mrb[2].mxu0  ;;  %v716_v56 = vsel %vm707_vm5, %v676_v53, 0.0 }
 0x297   : > { %711 = vst.msk [vmem:[%s181_s4 + $0x18] sm:$0xff] %vm707_vm5, %v923_v54  ;;  %v679_v55 = vpop.f32.mrb[3].mxu0  ;;  %v721_v61 = vsel %vm707_vm5, %v923_v54, 0.0 }
 0x298   : > { %709 = vst.msk [vmem:[%s181_s4 + $0x8] sm:$0xff] %vm707_vm5, %v679_v55  ;;  %v717_v57 = vsel %vm707_vm5, %v679_v55, 0.0 }
 0x299   : > { %v718_v58 = vadd.f32 %v717_v57, %v716_v56 }
 0x29b   : > { %v720_v60 = vadd.f32 %v719_v59, %v718_v58 }
 0x29d   : > { %v722_v62 = vadd.f32 %v721_v61, %v720_v60 }
 0x2c9   : > { %v926_v63 = vpop.f32.mrb[0].mxu1 }
 0x2ca   : > { %714 = vst.msk [vmem:[%s181_s4 + $0x30] sm:$0xff] %vm707_vm5, %v926_v63  ;;  %v692_v0 = vpop.f32.mrb[1].mxu1  ;;  %v727_v7 = vsel %vm707_vm5, %v926_v63, 0.0 }
 0x2cb   : > { %712 = vst.msk [vmem:[%s181_s4 + $0x20] sm:$0xff] %vm707_vm5, %v692_v0  ;;  %v723_v1 = vsel %vm707_vm5, %v692_v0, 0.0  ;;  %v927_v2 = vpop.f32.mrb[2].mxu1 }
 0x2cc   : > { %v724_v3 = vadd.f32 %v723_v1, %v722_v62  ;;  %715 = vst.msk [vmem:[%s181_s4 + $0x38] sm:$0xff] %vm707_vm5, %v927_v2  ;;  %v695_v4 = vpop.f32.mrb[3].mxu1  ;;  %v729_v9 = vsel %vm707_vm5, %v927_v2, 0.0 }
 0x2cd   : > { %713 = vst.msk [vmem:[%s181_s4 + $0x28] sm:$0xff] %vm707_vm5, %v695_v4  ;;  %v725_v5 = vsel %vm707_vm5, %v695_v4, 0.0 }
 0x2ce   : > { %v726_v6 = vadd.f32 %v725_v5, %v724_v3 }
 0x2d0   : > { %v728_v8 = vadd.f32 %v727_v7, %v726_v6 }
 0x2d2   : > { %v730_v10 = vadd.f32 %v729_v9, %v728_v8 }
 0x2d4   : > { %v731_v11 = vrot.slane %v730_v10, 4 }
 0x2d6   : > { %v732_v12 = vadd.f32 %v731_v11, %v730_v10 }
 0x2d8   : > { %v733_v13 = vrot.slane %v732_v12, 2 }
 0x2da   : > { %v734_v14 = vadd.f32 %v733_v13, %v732_v12 }
 0x2dc   : > { %v735_v15 = vrot.slane %v734_v14, 1 }
 0x2de   : > { %v736_v16 = vadd.f32 %v735_v15, %v734_v14 }
 0x2e0   : > { %v737_v17 = vmul.f32 0.015625, %v736_v16 }
 0x2e2   : > { %v738_v18 = vsub.f32 %v676_v53, %v737_v17  ;;  %v739_v19 = vsub.f32 %v679_v55, %v737_v17  ;;  %v740_v20 = vsub.f32 %v922_v24, %v737_v17  ;;  %v741_v21 = vsub.f32 %v923_v54, %v737_v17 }
 0x2e3   : > { %v742_v22 = vsub.f32 %v692_v0, %v737_v17  ;;  %v743_v23 = vsub.f32 %v695_v4, %v737_v17  ;;  %v744_v25 = vsub.f32 %v926_v63, %v737_v17  ;;  %v745_v26 = vsub.f32 %v927_v2, %v737_v17 }
 0x2e4   : > { %v746_v27 = vmul.f32 %v738_v18, %v738_v18  ;;  %v747_v28 = vmul.f32 %v739_v19, %v739_v19  ;;  %v748_v29 = vmul.f32 %v740_v20, %v740_v20  ;;  %v749_v30 = vmul.f32 %v741_v21, %v741_v21 }
 0x2e5   : > { %v750_v34 = vmul.f32 %v742_v22, %v742_v22  ;;  %v751_v37 = vmul.f32 %v743_v23, %v743_v23  ;;  %v752_v40 = vmul.f32 %v744_v25, %v744_v25  ;;  %v753_v43 = vmul.f32 %v745_v26, %v745_v26 }
 0x2e6   : > { %v754_v31 = vsel %vm707_vm5, %v746_v27, 0.0  ;;  %v755_v32 = vsel %vm707_vm5, %v747_v28, 0.0  ;;  %v757_v35 = vsel %vm707_vm5, %v748_v29, 0.0  ;;  %v759_v38 = vsel %vm707_vm5, %v749_v30, 0.0 }
 0x2e7   : > { %v756_v33 = vadd.f32 %v755_v32, %v754_v31  ;;  %v761_v41 = vsel %vm707_vm5, %v750_v34, 0.0  ;;  %v763_v44 = vsel %vm707_vm5, %v751_v37, 0.0  ;;  %v765_v46 = vsel %vm707_vm5, %v752_v40, 0.0 }
 0x2e8   : > { %v767_v48 = vsel %vm707_vm5, %v753_v43, 0.0 }
 0x2e9   : > { %v758_v36 = vadd.f32 %v757_v35, %v756_v33 }
 0x2eb   : > { %v760_v39 = vadd.f32 %v759_v38, %v758_v36 }
 0x2ed   : > { %v762_v42 = vadd.f32 %v761_v41, %v760_v39 }
 0x2ef   : > { %v764_v45 = vadd.f32 %v763_v44, %v762_v42 }
 0x2f1   : > { %v766_v47 = vadd.f32 %v765_v46, %v764_v45 }
 0x2f3   : > { %v768_v49 = vadd.f32 %v767_v48, %v766_v47 }
 0x2f5   : > { %v769_v50 = vrot.slane %v768_v49, 4 }
 0x2f7   : > { %v770_v51 = vadd.f32 %v769_v50, %v768_v49 }
 0x2f9   : > { %v771_v52 = vrot.slane %v770_v51, 2 }
 0x2fb   : > { %v772_v24 = vadd.f32 %v771_v52, %v770_v51 }
 0x2fd   : > { %v773_v53 = vrot.slane %v772_v24, 1 }
 0x2ff   : > { %v774_v54 = vadd.f32 %v773_v53, %v772_v24 }
 0x301   : > { %v776_v55 = vsel %vm775_vm6, %v737_v17, %v774_v54 }
 0x302   : > { %778 = vst.msk [vmem:[%s171_s6] sm:$0x3] %vm777_vm7, %v776_v55 }
 0x303   : > { %1002 = shalt.err (!%p999_p3)
}
 0x304   : > { %s1003_s26 = scalar_lea.hbm %s1452_s10, 32  ;;  %s1007_s29 = scalar_lea.hbm %s1497_s3, 64 }
 0x305   : > { %p1004_p4 = scmp.ne.s32.totalorder %s1452_s10, %s1003_s26  ;;  %p1008_p9 = scmp.lt.u32.totalorder %s1452_s10, %s1497_s3 }
 0x306   : > { %p1009_p10 = scmp.lt.u32.totalorder %s1007_s29, %s1003_s26  ;;  %p1011_p12 = scmp.lt.u32.totalorder %s1003_s26, %s1452_s10 }
 0x307   : > { %p1005_p7 = pnand %p1004_p4, %p1123_p5 }
 0x308   : > { %p1010_p11 = por %p1009_p10, %p1008_p9 }
 0x309   : > { %p1006_p8 = pneg %p1005_p7 }
 0x30a   : > { %p1012_p13 = por %p1011_p12, %p1010_p11 }
 0x30c   : > { %p1013_p0 = pnand %p1012_p13, %p1006_p8 }
 0x30e   : > { %1016 = shalt.err (!%p1013_p0)
}
 0x30f   : > { %936 = dma.vmem_to_hbm [thread:$0]  (%p1123_p5), %s1454_s7, 32, %s1452_s10, %s785_s11  }
 0x310 PF: > { %p942_p1 = scmp.ge.s32.totalorder %s1051_s15, 2  ;;  %s821_s24 = sand.u32 1, %s1039_s12  }
 0x311   : > { %s822_s25 = scalar_lea.sflag [#allocation4], %s821_s24 }
 0x312   : > { %p939_p2 = pnand %p942_p1, %p1127_p6 }
 0x314   : > { %1034 = dma.done.wait (!%p939_p2), %s822_s25, 32  }
 0x315   : > { %1036 = vsyncadd (!%p939_p2), %s822_s25, 4294967264  ;;  %p14_p3 = scmp.ge.s32.totalorder %s1110_s18, 4   ;;  %s1500_s12 = smov %s1043_s13 }
 0x316   : > { %s1501_s13 = smov %s1047_s14  ;;  %s1502_s14 = smov %s1121_s21 }
 0x317   : > { %s1503_s15 = smov %s1110_s18  ;;  %16 = sbr.rel (!%p14_p3) target bundleno = 3 (0x3), region = 77 }
 0x31e   :  { %827 = vsyncpa [#allocation4], 1 }
 0x31f   :  { %829 = vsyncpa [#allocation4 + $0x1], 1 }

</bundles_post_ra>
